<compile_context>
chip_gen: v7x
topology: tpu7x:2x2x1
jax: 0.10.0
libtpu: 0.0.40
codegen_flags: <defaults>
</compile_context>

<pallas_src>
import functools

import jax
import jax.numpy as jnp
from jax.experimental import pallas as pl
from jax.experimental.pallas import tpu as pltpu

_MIB = 1024 * 1024


def _round_up(x, m):
    return ((x + m - 1) // m) * m


def _sublane_multiple(dtype):
    itemsize = jnp.dtype(dtype).itemsize
    return {4: 8, 2: 16, 1: 32}.get(itemsize, 8)


def _gen_params():
    """Generation-aware (input-block byte target, scoped-VMEM limit)."""
    vmem_phys = None
    try:
        info = pltpu.get_tpu_info()
        vmem_phys = getattr(info, "vmem_capacity_bytes", None)
    except Exception:
        vmem_phys = None
    if vmem_phys is not None and vmem_phys > 64 * _MIB:
        # v5e / v6e: 128 MiB physical VMEM -> room for larger blocks.
        return 6 * _MIB, 64 * _MIB
    # v7x (64 MiB physical VMEM per TensorCore) or unknown: stay conservative.
    return 4 * _MIB, 32 * _MIB


def _pick_blocks(N, C, HW, dtype, target_block_bytes, vmem_limit_bytes):
    """Pick (bn, tile_hw) so one input block is ~target_block_bytes and the
    double-buffered working set (in+out blocks + f32 temps) fits VMEM."""
    itemsize = jnp.dtype(dtype).itemsize
    c_eff = _round_up(C, _sublane_multiple(dtype))     # sublane-padded C
    hw_pad = _round_up(HW, 128)
    fit_budget = vmem_limit_bytes - 2 * _MIB

    # VMEM per lane-column of one block:
    #   2 x (in + out) double-buffered blocks in the input dtype
    #   + ~3 f32 widened temporaries (xf, a product, the f32 result).
    bytes_per_lane = 2 * 2 * c_eff * itemsize + 3 * c_eff * 4
    if bytes_per_lane * 128 > fit_budget:
        # TODO(synk): add a C-split reduction grid axis ("arbitrary") with a
        # per-lane sumsq accumulator for very large channel counts.
        raise ValueError(
            f"Normalize kernel: C={C} is too large to fit a single (C x 128) "
            f"block in VMEM (needs ~{bytes_per_lane * 128 // _MIB} MiB, "
            f"limit {vmem_limit_bytes // _MIB} MiB)."
        )

    in_bytes_per_lane = c_eff * itemsize

    # Spatial (lane) tile: as many 128-lane groups as the byte target allows,
    # capped at the (padded) spatial extent.
    max_lanes = max(target_block_bytes // in_bytes_per_lane, 128)
    tile_hw = min((max_lanes // 128) * 128, hw_pad)
    tile_hw = max(tile_hw, 128)

    # Batch blocking: if one spatial tile already covers the whole image and
    # is still below the byte target, fold several batch elements per block.
    bn = 1
    if tile_hw >= hw_pad:
        tile_hw = hw_pad
        block_bytes = in_bytes_per_lane * tile_hw
        if block_bytes < target_block_bytes and N > 1:
            bn = min(N, max(1, target_block_bytes // max(block_bytes, 1)))

    # Shrink until the working set fits the scoped-VMEM budget.
    while bn > 1 and bn * bytes_per_lane * tile_hw > fit_budget:
        bn //= 2
    while tile_hw > 128 and bn * bytes_per_lane * tile_hw > fit_budget:
        tile_hw = max(128, _round_up(tile_hw // 2, 128))

    # v7x megacore: guarantee >= 2 grid steps along a parallel axis.
    if pl.cdiv(N, bn) * pl.cdiv(HW, tile_hw) < 2:
        if N >= 2:
            bn = pl.cdiv(N, 2)
        elif hw_pad >= 256:
            tile_hw = _round_up(pl.cdiv(HW, 2), 128)

    return bn, tile_hw


def _normalize_kernel(x_ref, o_ref, *, p, eps):
    # Block: (BN, C, TILE_HW) -- a few batch elements, full channels, lane tile.
    x = x_ref[...]
    xf = x.astype(jnp.float32)                     # widen only inside the kernel

    if p == 2:
        sumsq = jnp.sum(xf * xf, axis=1, keepdims=True)
        # rsqrt(max(sumsq, eps^2)) == 1 / max(sqrt(sumsq), eps): one EUP op
        # instead of sqrt + divide (eps^2 = 1e-20 is a normal f32).
        inv = jax.lax.rsqrt(
            jnp.maximum(sumsq, jnp.float32(eps) * jnp.float32(eps)))
    elif p == 1:
        s = jnp.sum(jnp.abs(xf), axis=1, keepdims=True)
        inv = 1.0 / jnp.maximum(s, jnp.float32(eps))
    elif float(p) == int(p) and p > 0:
        # Integer p: repeated multiplies on the VPU, no exp/log pow on the EUP.
        absx = jnp.abs(xf)
        pw = absx
        for _ in range(int(p) - 1):
            pw = pw * absx
        norm = jnp.sum(pw, axis=1, keepdims=True) ** (1.0 / float(p))
        inv = 1.0 / jnp.maximum(norm, jnp.float32(eps))
    else:
        # Non-integer p: pow (exp/log on EUP), matches the reference.
        norm = jnp.sum(jnp.abs(xf) ** p, axis=1, keepdims=True) ** (1.0 / p)
        inv = 1.0 / jnp.maximum(norm, jnp.float32(eps))

    # Divide (as a multiply) in f32 with a single rounding to the output
    # dtype: matches the reference; free since the kernel is HBM-bound.
    o_ref[...] = (xf * inv).astype(o_ref.dtype)


def normalize(x, p=2, dim=1, eps=1e-10):
    """Pallas equivalent of torch.nn.functional.normalize(x, p, dim, eps).

    Supports the module's default/common case: 4-D NCHW input, dim=1.
    """
    assert x.ndim == 4, "expected NCHW input"
    assert dim == 1, "this kernel implements normalization over the channel dim"
    N, C, H, W = x.shape
    HW = H * W

    target_block_bytes, vmem_limit_bytes = _gen_params()
    bn, tile_hw = _pick_blocks(N, C, HW, x.dtype,
                               target_block_bytes, vmem_limit_bytes)

    x3 = x.reshape(N, C, HW)
    kernel = functools.partial(_normalize_kernel, p=p, eps=eps)

    out3 = pl.pallas_call(
        kernel,
        out_shape=jax.ShapeDtypeStruct((N, C, HW), x.dtype),
        grid_spec=pltpu.PrefetchScalarGridSpec(
            num_scalar_prefetch=0,
            # Ragged N / HW handled by Pallas boundary masking of the last
            # block (no host-side pad / slice round trips through HBM).
            grid=(pl.cdiv(N, bn), pl.cdiv(HW, tile_hw)),
            in_specs=[pl.BlockSpec((bn, C, tile_hw), lambda nb, j: (nb, 0, j))],
            out_specs=pl.BlockSpec((bn, C, tile_hw), lambda nb, j: (nb, 0, j)),
        ),
        compiler_params=pltpu.CompilerParams(
            # All blocks fully independent -> megacore sharding on v7x.
            dimension_semantics=("parallel", "parallel"),
            vmem_limit_bytes=vmem_limit_bytes,
        ),
    )(x3)

    return out3.reshape(N, C, H, W)


def _reference(x, p=2, dim=1, eps=1e-10):
    xf = x.astype(jnp.float32)
    norm = jnp.sum(jnp.abs(xf) ** p, axis=dim, keepdims=True) ** (1.0 / p)
    return (xf / jnp.maximum(norm, eps)).astype(x.dtype)


if __name__ == "__main__":
    key = jax.random.PRNGKey(0)

    # Main case: NCHW, channels-dim L2 normalize (128-aligned HW).
    x = jax.random.normal(key, (2, 4, 16, 16), dtype=jnp.float32)
    out = jax.block_until_ready(normalize(x, p=2, dim=1, eps=1e-10))
    ref = _reference(x)
    assert out.shape == x.shape and out.dtype == x.dtype
    assert jnp.allclose(out, ref, atol=1e-5, rtol=1e-5)

    # Ragged spatial extent (HW % 128 != 0): exercises the masked last block.
    x2 = jax.random.normal(jax.random.PRNGKey(1), (2, 4, 10, 10),
                           dtype=jnp.float32)
    out2 = jax.block_until_ready(normalize(x2, p=2, dim=1, eps=1e-10))
    assert jnp.allclose(out2, _reference(x2), atol=1e-5, rtol=1e-5)

    # Larger batch, tiny C (sublane-padded), exercises batch blocking.
    x3 = jax.random.normal(jax.random.PRNGKey(2), (8, 3, 32, 32),
                           dtype=jnp.float32)
    out3 = jax.block_until_ready(normalize(x3, p=2, dim=1, eps=1e-10))
    assert jnp.allclose(out3, _reference(x3), atol=1e-5, rtol=1e-5)

    # bf16 input: f32 reduction + single rounding at the store.
    x4 = jax.random.normal(jax.random.PRNGKey(3), (2, 4, 16, 16),
                           dtype=jnp.bfloat16)
    out4 = jax.block_until_ready(normalize(x4, p=2, dim=1, eps=1e-10))
    assert out4.dtype == jnp.bfloat16
    assert jnp.allclose(out4.astype(jnp.float32),
                        _reference(x4).astype(jnp.float32),
                        atol=2e-2, rtol=2e-2)

    print("KERNEL_OK")
</pallas_src>

<mosaic_0001>
module attributes {stable_mosaic.version = 11 : i64} {
  func.func @_normalize_kernel(%arg0: i32, %arg1: i32, %arg2: memref<1x4x256xf32, #tpu.memory_space<vmem>>, %arg3: memref<1x4x256xf32, #tpu.memory_space<vmem>>) attributes {dimension_semantics = [#tpu.dimension_semantics<parallel>, #tpu.dimension_semantics<parallel>], iteration_bounds = array<i64: 2, 1>, scalar_prefetch = 0 : i64, scratch_operands = 0 : i64, tpu.core_type = #tpu.core_type<tc>, window_params = [{transform_indices = @transform_0, window_bounds = array<i64: 1, 4, 256>}, {transform_indices = @transform_1, window_bounds = array<i64: 1, 4, 256>}]} {
    %c0 = arith.constant 0 : index
    %c0_0 = arith.constant 0 : index
    %c0_1 = arith.constant 0 : index
    %0 = vector.load %arg2[%c0, %c0_0, %c0_1] : memref<1x4x256xf32, #tpu.memory_space<vmem>>, vector<1x4x256xf32>
    %1 = arith.mulf %0, %0 : vector<1x4x256xf32>
    %cst = arith.constant dense<0.000000e+00> : vector<1x256xf32>
    %2 = vector.multi_reduction <add>, %1, %cst [1] : vector<1x4x256xf32> to vector<1x256xf32>
    %3 = vector.shape_cast %2 : vector<1x256xf32> to vector<1x1x256xf32>
    %cst_2 = arith.constant 1.000000e-10 : f32
    %cst_3 = arith.constant 1.000000e-10 : f32
    %4 = arith.mulf %cst_2, %cst_3 : f32
    %5 = vector.broadcast %4 : f32 to vector<1x1x256xf32>
    %6 = arith.maximumf %3, %5 : vector<1x1x256xf32>
    %7 = math.rsqrt %6 : vector<1x1x256xf32>
    %8 = vector.broadcast %7 : vector<1x1x256xf32> to vector<1x4x256xf32>
    %9 = arith.mulf %0, %8 : vector<1x4x256xf32>
    %c0_4 = arith.constant 0 : index
    %c0_5 = arith.constant 0 : index
    %c0_6 = arith.constant 0 : index
    %10 = vector.load %arg3[%c0_4, %c0_5, %c0_6] : memref<1x4x256xf32, #tpu.memory_space<vmem>>, vector<1x4x256xf32>
    tpu.vector_store %arg3[%c0_4, %c0_5, %c0_6], %9 {strides = array<i32>} : memref<1x4x256xf32, #tpu.memory_space<vmem>>, vector<1x4x256xf32>,
    return
  }
  func.func @transform_0(%arg0: i32, %arg1: i32) -> (i32, i32, i32) {
    %c0_i32 = arith.constant 0 : i32
    %c0_i32_0 = arith.constant 0 : i32
    return %arg0, %c0_i32, %arg1 : i32, i32, i32
  }
  func.func @transform_1(%arg0: i32, %arg1: i32) -> (i32, i32, i32) {
    %c0_i32 = arith.constant 0 : i32
    %c0_i32_0 = arith.constant 0 : i32
    return %arg0, %c0_i32, %arg1 : i32, i32, i32
  }
}

</mosaic_0001>

<bundles_post_ra>
// kernel: tpu_custom_call.1
= control target key start
LH: loop header
LB: loop body
LE: loop exit
PB: predicated region body
PF: predicated region fallthrough
CT: control target
= control target key end

     0   :  { %6 = vsyncpa [#allocation3], 0  ;;  %s665_s0 = inlined_call_operand.hbm [shape: f32[2,4,256], index: 0, kind: input, shape index: {}]   ;;  %s666_s1 = inlined_call_operand.hbm [shape: f32[2,4,256], index: 1, kind: output, shape index: {}]  }
   0x1   :  { %8 = vsyncpa [#allocation3 + $0x1], 0 }
   0x2   :  { %9 = vsyncpa [#allocation4], 0 }
   0x3   :  { %11 = vsyncpa [#allocation4 + $0x1], 0  ;;  %s493_s6 = smov 0   ;;  %s495_s7 = smov 0  }
   0x4   :  { %s497_s8 = smov 0   ;;  %s499_s9 = smov 0  }
   0x5   :  { %s501_s10 = smov 0   ;;  %s503_s11 = smov 0  }
   0x6 LB: > { %s284_s12 = sadd.s32 4294967295, %s479_s11   ;;  %s285_s13 = sadd.s32 4294967294, %s479_s11   ;;  %s479_s11 = sphi %s503_s11, %s17_s11   ;;  %s475_s10 = sphi %s501_s10, %s682_s10   ;;  %s471_s9 = sphi %s499_s9, %s681_s9   ;;  %s467_s8 = sphi %s497_s8, %s680_s8   ;;  %s463_s7 = sphi %s495_s7, %s679_s7   ;;  %s459_s6 = sphi %s493_s6, %s678_s6  }
   0x7   : > { %s29_s14 = sadd.s32 1, %s475_s10  ;;  %s38_s15 = sadd.s32 1, %s467_s8 }
   0x8   : > { %p31_p0 = scmp.ge.s32.totalorder %s29_s14, 2  ;;  %p45_p1 = scmp.ne.s32.totalorder %s467_s8, %s463_s7 }
   0x9   : > { %p46_p2 = scmp.eq.s32.totalorder %s479_s11, 0  ;;  %p51_p3 = scmp.ne.s32.totalorder %s463_s7, %s459_s6 }
   0xa   : > { %s684_s14 = smov (%p31_p0, %s29_s14), 0  ;;  %p52_p5 = scmp.eq.s32.totalorder %s284_s12, 0 }
   0xb   : > { %p534_p4 = por %p46_p2, %p45_p1  ;;  %s33_s17 = ssub.s32 %s475_s10, %s684_s14 }
   0xc   : > { %p77_p6 = scmp.eq.s32.totalorder %s284_s12, 1  ;;  %p36_p7 = scmp.eq.s32.totalorder %s33_s17, 0 }
   0xd   : > { %p540_p8 = por %p52_p5, %p51_p3  ;;  %p83_p10 = scmp.eq.s32.totalorder %s285_s13, 1 }
   0xe   : > { %p544_p9 = por %p77_p6, %p45_p1  ;;  %p313_p13 = scmp.lt.s32.totalorder %s479_s11, 2 }
   0xf   : > { %s549_s20 = scalar_select %p36_p7, %s467_s8, %s38_s15  }
  0x10   : > { %s670_s19 = scalar_select %p544_p9, 1, 0 }
  0x11   : > { %p551_p11 = por %p83_p10, %p51_p3  ;;  %s103_s22 = sand.u32 1, %s467_s8  }
  0x12   : > { %s288_s23 = sshll.u32 %s103_s22, 3  ;;  %s299_s24 = sshll.u32 %s475_s10, 7 }
  0x13   : > { %s671_s21 = scalar_select %p551_p11, 1, 0 }
  0x14   : > { %s562_s27 = scalar_lea.hbm %s665_s0, %s299_s24  ;;  %s107_s28 = scalar_lea.vmem [#allocation2], %s288_s23 }
  0x15   : > { %s117_s29 = sshll.u32 %s107_s28, 4  ;;  %p568_p0 = pnand %p313_p13, %p534_p4  ;;  %s564_s29 = int_to_ptr.vmem [resolvable:$true] %s117_s29 }
  0x16   : > { %s104_s2 = scalar_lea.sflag [#allocation3], %s103_s22  ;;  %s367_s3 = scalar_lea.hbm %s562_s27, 128 }
  0x17   : > { %p368_p3 = scmp.ne.s32.totalorder %s562_s27, %s367_s3  ;;  %p369_p5 = pneg %p568_p0 }
  0x18   : > { %s372_s12 = scalar_lea.hbm %s665_s0, 256  ;;  %p373_p4 = scmp.lt.u32.totalorder %s562_s27, %s665_s0 }
  0x19   : > { %p370_p6 = pnand %p369_p5, %p368_p3  ;;  %p374_p10 = scmp.lt.u32.totalorder %s372_s12, %s367_s3 }
  0x1a   : > { %p376_p12 = scmp.lt.u32.totalorder %s367_s3, %s562_s27 }
  0x1b   : > { %p371_p7 = pneg %p370_p6  ;;  %p375_p13 = por %p374_p10, %p373_p4 }
  0x1d   : > { %p377_p1 = por %p376_p12, %p375_p13 }
  0x1f   : > { %p378_p2 = pnand %p377_p1, %p371_p7 }
  0x21   : > { %381 = shalt.err (!%p378_p2)
}
  0x22   : > { %s382_s16 = scalar_lea.vmem %s564_s29, 128  ;;  %s481_s17 = smov [#allocation2]  }
  0x23   : > { %p383_p3 = scmp.ne.s32.totalorder %s564_s29, %s382_s16  ;;  %s387_s22 = sshll.u32 %s481_s17, 4  ;;  %s388_s22 = int_to_ptr.vmem [resolvable:$false] %s387_s22 }
  0x24   : > { %s389_s23 = scalar_lea.vmem %s388_s22, 256  ;;  %p390_p9 = scmp.lt.s32.totalorder %s564_s29, %s388_s22 }
  0x25   : > { %p385_p6 = pnand %p383_p3, %p369_p5  ;;  %p391_p4 = scmp.lt.s32.totalorder %s389_s23, %s382_s16 }
  0x27   : > { %p386_p11 = pneg %p385_p6  ;;  %p392_p10 = por %p391_p4, %p390_p9 }
  0x29   : > { %p393_p12 = pnand %p392_p10, %p386_p11 }
  0x2b   : > { %396 = shalt.err (!%p393_p12)
}
  0x2c   : > { %308 = dma.hbm_to_vmem [thread:$0]  (!%p568_p0), %s562_s27, 128, %s564_s29, %s104_s2  }
  0x2d   : > { %p673_p1 = scmp.lt.s32.totalorder %s479_s11, 3  ;;  %p674_p2 = scmp.ge.s32.totalorder %s479_s11, 1 }
  0x2f   : > { %p123_p5 = pnand %p674_p2, %p673_p1 }
  0x30   : > { %s604_s24 = sand.u32 (!%p123_p5), 1, %s463_s7  }
  0x31   : > { %126 = sbr.rel (%p123_p5) target bundleno = 106 (0x6a), region = 24  ;;  %s292_s25 = sshll.u32 (!%p123_p5), %s604_s24, 3 }
  0x32   : > { %s129_s26 = scalar_lea.sflag (!%p123_p5), [#allocation3], %s604_s24  ;;  %s132_s28 = scalar_lea.vmem (!%p123_p5), [#allocation2], %s292_s25 }
  0x38   : > { %450 = dma.done.wait (%p540_p8), %s129_s26, 128  }
  0x39   : > { %452 = vsyncadd (%p540_p8), %s129_s26, 4294967168  ;;  %v153_v0 = vld [vmem:[%s132_s28] sm:$0xff]  ;;  %vm158_vm0 = vcmask 1043456   ;;  %s150_s18 = scalar_lea.vmem [#allocation5], %s292_s25  ;;  %s300_s29 = sshll.u32 %s471_s9, 7 }
  0x3a   : > { %v154_v1 = vmul.f32 %v153_v0, %v153_v0  ;;  %s200_s27 = sshll.u32 %s150_s18, 4  ;;  %s618_s3 = scalar_lea.hbm %s666_s1, %s300_s29  ;;  %s613_s27 = int_to_ptr.vmem [resolvable:$true] %s200_s27 }
  0x3b   : > { %s184_s4 = scalar_lea.sflag [#allocation4], %s604_s24  ;;  %s397_s5 = scalar_lea.vmem %s613_s27, 128 }
  0x3c   : > { %v156_v2 = vcombine.high %v154_v1, %v154_v1  ;;  %v159_v3 = vsel %vm158_vm0, %v154_v1, 0.0  ;;  %p398_p8 = scmp.ne.s32.totalorder %s613_s27, %s397_s5  ;;  %p675_p9 = scmp.ne.s32.totalorder %s670_s19, 0 }
  0x3d   : > { %v160_v4 = vrot.slane %v159_v3, 4  ;;  %s482_s9 = smov [#allocation5]  }
  0x3e   : > { %v166_v5 = vsel %vm158_vm0, %v156_v2, 0.0  ;;  %p399_p11 = pnand %p398_p8, %p675_p9  ;;  %s401_s12 = sshll.u32 %s482_s9, 4  ;;  %s402_s12 = int_to_ptr.vmem [resolvable:$false] %s401_s12 }
  0x3f   : > { %v161_v6 = vadd.f32 %v160_v4, %v159_v3  ;;  %v167_v7 = vrot.slane %v166_v5, 4  ;;  %s403_s13 = scalar_lea.vmem %s402_s12, 256  ;;  %p404_p7 = scmp.lt.s32.totalorder %s613_s27, %s402_s12 }
  0x40   : > { %p400_p0 = pneg %p399_p11  ;;  %p405_p13 = scmp.lt.s32.totalorder %s403_s13, %s397_s5 }
  0x41   : > { %v162_v8 = vrot.slane %v161_v6, 2  ;;  %v168_v9 = vadd.f32 %v167_v7, %v166_v5 }
  0x42   : > { %p406_p3 = por %p405_p13, %p404_p7 }
  0x43   : > { %v163_v10 = vadd.f32 %v162_v8, %v161_v6  ;;  %v169_v11 = vrot.slane %v168_v9, 2 }
  0x44   : > { %p407_p6 = pnand %p406_p3, %p400_p0 }
  0x45   : > { %v164_v12 = vrot.slane %v163_v10, 1  ;;  %v170_v13 = vadd.f32 %v169_v11, %v168_v9 }
  0x47   : > { %v165_v14 = vadd.f32 %v164_v12, %v163_v10  ;;  %v171_v15 = vrot.slane %v170_v13, 1 }
  0x49   : > { %v172_v16 = vadd.f32 %v171_v15, %v170_v13  ;;  %v173_v17 = vmax.f32 %v165_v14, 1.00000005e-20 }
  0x4b   : > { %v174_v18 = vmax.f32 %v172_v16, 1.00000005e-20  ;;  %363 = vrsqrt.f32 %v173_v17 }
  0x4d   : > { %365 = vrsqrt.f32 %v174_v18 }
  0x55   : > { %v364_v19 = vpop.eup %363 }
  0x57   : > { %v366_v20 = vpop.eup %365 }
  0x58   : > { %v179_v21 = vcombine.low %v364_v19, %v366_v20 }
  0x5a   : > { %v181_v22 = vmul.f32 %v179_v21, %v153_v0 }
  0x5c   : > { %182 = vst [vmem:[%s150_s18] sm:$0xff] %v181_v22 }
  0x5d   : > { %410 = shalt.err (!%p407_p6)
}
  0x5e   : > { %s411_s15 = scalar_lea.hbm %s618_s3, 128  ;;  %s415_s22 = scalar_lea.hbm %s666_s1, 256 }
  0x5f   : > { %p412_p4 = scmp.ne.s32.totalorder %s618_s3, %s411_s15  ;;  %p416_p1 = scmp.lt.u32.totalorder %s618_s3, %s666_s1 }
  0x60   : > { %p417_p2 = scmp.lt.u32.totalorder %s415_s22, %s411_s15  ;;  %p419_p8 = scmp.lt.u32.totalorder %s411_s15, %s618_s3 }
  0x61   : > { %p413_p10 = pnand %p412_p4, %p675_p9 }
  0x62   : > { %p418_p5 = por %p417_p2, %p416_p1 }
  0x63   : > { %p414_p12 = pneg %p413_p10 }
  0x64   : > { %p420_p11 = por %p419_p8, %p418_p5 }
  0x66   : > { %p421_p0 = pnand %p420_p11, %p414_p12 }
  0x68   : > { %424 = shalt.err (!%p421_p0)
}
  0x69   : > { %303 = dma.vmem_to_hbm [thread:$0]  (%p675_p9), %s613_s27, 128, %s618_s3, %s184_s4  }
  0x6a PF: > { %s212_s25 = sand.u32 1, %s459_s6   ;;  %p676_p7 = scmp.ne.s32.totalorder %s671_s21, 0 }
  0x6b   : > { %p677_p13 = scmp.ge.s32.totalorder %s479_s11, 2  ;;  %s213_s26 = scalar_lea.sflag [#allocation4], %s212_s25 }
  0x6d   : > { %p310_p3 = pnand %p677_p13, %p676_p7 }
  0x6f   : > { %454 = dma.done.wait (!%p310_p3), %s213_s26, 128  }
  0x70   : > { %456 = vsyncadd (!%p310_p3), %s213_s26, 4294967168  ;;  %s17_s11 = sadd.s32 1, %s479_s11   ;;  %s678_s6 = smov %s463_s7 }
  0x71   : > { %p14_p6 = scmp.ge.s32.totalorder %s17_s11, 4   ;;  %s679_s7 = smov %s467_s8 }
  0x72   : > { %s680_s8 = smov %s549_s20  ;;  %s681_s9 = smov %s475_s10 }
  0x73   : > { %s682_s10 = smov %s684_s14  ;;  %16 = sbr.rel (!%p14_p6) target bundleno = 6 (0x6), region = 69 }
  0x7a   :  { %218 = vsyncpa [#allocation3], 1 }
  0x7b   :  { %220 = vsyncpa [#allocation3 + $0x1], 1 }
  0x7c   :  { %221 = vsyncpa [#allocation4], 1 }
  0x7d   :  { %223 = vsyncpa [#allocation4 + $0x1], 1 }

</bundles_post_ra>
